<compile_context>
chip_gen: v7x
topology: tpu7x:2x2x1
jax: 0.10.0
libtpu: 0.0.40
codegen_flags: <defaults>
</compile_context>

<pallas_src>
import functools

import jax
import jax.numpy as jnp
from jax import lax
from jax.experimental import pallas as pl
from jax.experimental.pallas import tpu as pltpu

ALPHA = 0.25
GAMMA = 2.0

LANES = 128
DEFAULT_SLAB_ROWS = 512               # strip-mine granularity inside a block
TARGET_BLOCK_BYTES = 8 * 1024 * 1024  # per grid step, both inputs combined


def _round_up(n, m):
    return ((n + m - 1) // m) * m


def _num_tensorcores():
    """2 TensorCores per chip on v7x-class devices; 1 otherwise."""
    try:
        kind = jax.devices()[0].device_kind.lower()
    except Exception:
        return 1
    if "v7" in kind or "tpu7" in kind:
        return 2
    return 1


def _choose_tiling(rows, bytes_per_elem_pair, max_block_rows=None, slab_rows=None):
    slab = DEFAULT_SLAB_ROWS if slab_rows is None else max(8, _round_up(int(slab_rows), 8))
    if max_block_rows is None:
        cap = TARGET_BLOCK_BYTES // (LANES * bytes_per_elem_pair)
        cap = max(slab, (cap // slab) * slab)
    else:
        cap = max(slab, _round_up(int(max_block_rows), slab))
    if rows <= slab:
        tile = max(8, _round_up(rows, 8))
        return tile, tile
    tile = min(cap, _round_up(rows, slab))
    return tile, slab


def _focal_loss_kernel(x_ref, y_ref, out_ref, *, alpha, gamma, binary_targets,
                       rows_valid_total, tile_rows, slab_rows, blocks_per_core,
                       need_mask):
    c = pl.program_id(0)
    j = pl.program_id(1)

    @pl.when(j == 0)
    def _init():
        out_ref[...] = jnp.zeros_like(out_ref)

    num_slabs = tile_rows // slab_rows

    def slab_focal_sum(row0, row_mask=None):
        # Cast in-kernel (inputs stay in their source dtype in HBM/VMEM).
        x = x_ref[pl.ds(row0, slab_rows), :].astype(jnp.float32)
        y = y_ref[pl.ds(row0, slab_rows), :].astype(jnp.float32)

        # Numerically stable BCE-with-logits, reduction='none'.
        e = jnp.exp(-jnp.abs(x))
        bce = jnp.maximum(x, 0.0) - x * y + jnp.log1p(e)

        if binary_targets:
            # pt = sigmoid((2y-1)*x)  ==  exp(-bce) exactly for y in {0,1}.
            # Reuses e = exp(-|x|): one fewer transcendental per element.
            z = x * (2.0 * y - 1.0)
            numer = jnp.where(z >= 0.0, 1.0, e)
            pt = numer * pl.reciprocal(1.0 + e, approx=False)
        else:
            pt = jnp.exp(-bce)  # exact for soft labels

        one_minus_pt = 1.0 - pt
        if float(gamma) == 2.0:
            mod = one_minus_pt * one_minus_pt        # VPU mul, keeps EUP free
        elif float(gamma) == 1.0:
            mod = one_minus_pt
        elif float(gamma) == 0.0:
            mod = jnp.ones_like(one_minus_pt)
        else:
            # Clamp: rounding can make pt marginally > 1; power(neg, non-int) is NaN.
            mod = jnp.power(jnp.maximum(one_minus_pt, 0.0), gamma)

        focal = alpha * mod * bce
        if row_mask is not None:
            focal = jnp.where(row_mask, focal, 0.0)
        # Collapse to (8, LANES) with plain vreg adds (VPU only).
        return jnp.sum(focal.reshape(slab_rows // 8, 8, LANES), axis=0)

    if not need_mask:
        # Steady state: every slab of every block is fully valid.
        def body(s, carry):
            row0 = pl.multiple_of(s * slab_rows, 8)
            out_ref[...] += slab_focal_sum(row0)
            return carry
        lax.fori_loop(0, num_slabs, body, 0, unroll=num_slabs <= 8)
    else:
        # Mask hoisted out of the hot loop: full slabs run unmasked, only the single
        # boundary slab (if any) pays the row-level iota/compare/select.
        block_idx = c * blocks_per_core + j
        valid = jnp.clip(rows_valid_total - block_idx * tile_rows, 0, tile_rows)
        full_slabs = valid // slab_rows
        partial_rows = valid - full_slabs * slab_rows

        def body(s, carry):
            row0 = pl.multiple_of(s * slab_rows, 8)
            out_ref[...] += slab_focal_sum(row0)
            return carry
        lax.fori_loop(0, full_slabs, body, 0)

        @pl.when(partial_rows > 0)
        def _boundary_slab():
            row0 = pl.multiple_of(full_slabs * slab_rows, 8)
            row_ids = lax.broadcasted_iota(jnp.int32, (slab_rows, LANES), 0)
            out_ref[...] += slab_focal_sum(row0, row_mask=row_ids < partial_rows)


def _focal_elementwise(x, y, alpha, gamma):
    """Plain-JAX reference formula (used for the <128-element ragged tail)."""
    x = x.astype(jnp.float32)
    y = y.astype(jnp.float32)
    bce = jnp.maximum(x, 0.0) - x * y + jnp.log1p(jnp.exp(-jnp.abs(x)))
    pt = jnp.exp(-bce)
    omp = 1.0 - pt
    if float(gamma) == 2.0:
        mod = omp * omp
    else:
        mod = jnp.power(jnp.maximum(omp, 0.0), gamma)
    return alpha * mod * bce


def focal_loss_pallas(y_pred_logits, y_true, alpha=ALPHA, gamma=GAMMA, *,
                      binary_targets=True, max_block_rows=None, slab_rows=None,
                      num_cores=None):
    assert y_pred_logits.shape == y_true.shape
    total = int(y_pred_logits.size)
    if total == 0:
        return jnp.float32(float("nan"))  # torch .mean() of empty tensor

    x_flat = y_pred_logits.reshape(-1)
    y_flat = y_true.reshape(-1)

    rows = total // LANES
    tail = total - rows * LANES

    if rows == 0:
        # Tiny input (<128 elements): plain JAX.
        return jnp.sum(_focal_elementwise(x_flat, y_flat, alpha, gamma)) / jnp.float32(total)

    tail_sum = jnp.float32(0.0)
    if tail:
        # TODO(synk): a 1-D / BoundedSlice tail BlockSpec would avoid this O(N) prefix
        # slice; the <128-element tail itself is folded in with plain JAX.
        tail_sum = jnp.sum(_focal_elementwise(x_flat[rows * LANES:],
                                              y_flat[rows * LANES:], alpha, gamma))
        x_flat = x_flat[: rows * LANES]
        y_flat = y_flat[: rows * LANES]

    x2 = x_flat.reshape(rows, LANES)
    y2 = y_flat.reshape(rows, LANES)

    itembytes = x2.dtype.itemsize + y2.dtype.itemsize
    tile_rows, slab = _choose_tiling(rows, itembytes, max_block_rows, slab_rows)
    num_blocks = -(-rows // tile_rows)

    detected = _num_tensorcores() if num_cores is None else int(num_cores)
    nc_try = detected if (detected > 1 and num_blocks > 1) else 1

    def run(nc):
        bpc = -(-num_blocks // nc)
        need_mask = (nc * bpc * tile_rows) != rows

        kernel = functools.partial(
            _focal_loss_kernel,
            alpha=float(alpha), gamma=float(gamma),
            binary_targets=bool(binary_targets),
            rows_valid_total=rows, tile_rows=tile_rows, slab_rows=slab,
            blocks_per_core=bpc, need_mask=need_mask,
        )

        block_bytes = tile_rows * LANES * itembytes          # both inputs, one block
        vmem_limit = int(min(64 << 20, max(32 << 20, 2 * block_bytes + (8 << 20))))

        def in_index(c, j):
            # Clamp so the DMA never targets a fully out-of-range block (the kernel's
            # valid-row clamp makes such overhang blocks contribute nothing).
            return (jnp.minimum(c * bpc + j, num_blocks - 1), 0)

        grid_spec = pltpu.PrefetchScalarGridSpec(
            num_scalar_prefetch=0,
            grid=(nc, bpc),
            in_specs=[
                pl.BlockSpec((tile_rows, LANES), in_index),
                pl.BlockSpec((tile_rows, LANES), in_index),
            ],
            # Lane-dense per-core partial sums; output block is resident across the
            # reduction axis and used directly as the accumulator.
            out_specs=pl.BlockSpec((8, LANES), lambda c, j: (c, 0)),
        )

        lead_sem = pltpu.CORE_PARALLEL if nc > 1 else pltpu.ARBITRARY
        partials = pl.pallas_call(
            kernel,
            out_shape=jax.ShapeDtypeStruct((nc * 8, LANES), jnp.float32),
            grid_spec=grid_spec,
            compiler_params=pltpu.CompilerParams(
                dimension_semantics=(lead_sem, pltpu.ARBITRARY),
                vmem_limit_bytes=vmem_limit,
            ),
        )(x2, y2)
        return partials

    try:
        partials = run(nc_try)
    except Exception:
        if nc_try == 1:
            raise
        partials = run(1)  # conservative single-TensorCore fallback

    return (jnp.sum(partials) + tail_sum) / jnp.float32(total)


def focal_loss_ref(x, y, alpha=ALPHA, gamma=GAMMA):
    x = x.astype(jnp.float32)
    y = y.astype(jnp.float32)
    bce = jnp.maximum(x, 0.0) - x * y + jnp.log1p(jnp.exp(-jnp.abs(x)))
    pt = jnp.exp(-bce)
    focal = alpha * jnp.power(1.0 - pt, gamma) * bce
    return jnp.mean(focal)


if __name__ == "__main__":
    key = jax.random.PRNGKey(0)
    k1, k2, k3, k4 = jax.random.split(key, 4)

    # Primary: small NCHW logits + binary targets.
    logits = jax.random.normal(k1, (2, 4, 16, 16), dtype=jnp.float32) * 2.0
    targets = (jax.random.uniform(k2, (2, 4, 16, 16)) > 0.5).astype(jnp.float32)
    loss = jax.block_until_ready(focal_loss_pallas(logits, targets))
    ref = focal_loss_ref(logits, targets)
    assert jnp.allclose(loss, ref, rtol=1e-5, atol=1e-6), (loss, ref)

    # Exercise multi-block grid, strip-mined slabs, boundary-slab masking and the
    # ragged (<128-elem) tail path with tiny tiles (same code paths as huge inputs).
    logits2 = jax.random.normal(k3, (3, 10, 130), dtype=jnp.float32)
    targets2 = (jax.random.uniform(k4, (3, 10, 130)) > 0.5).astype(jnp.float32)
    loss2 = jax.block_until_ready(
        focal_loss_pallas(logits2, targets2, max_block_rows=16, slab_rows=8))
    ref2 = focal_loss_ref(logits2, targets2)
    assert jnp.allclose(loss2, ref2, rtol=1e-5, atol=1e-6), (loss2, ref2)

    print("KERNEL_OK")
</pallas_src>

<mosaic_0001>
module attributes {stable_mosaic.version = 11 : i64} {
  func.func @_focal_loss_kernel(%arg0: i32, %arg1: i32, %arg2: memref<16x128xf32, #tpu.memory_space<vmem>>, %arg3: memref<16x128xf32, #tpu.memory_space<vmem>>, %arg4: memref<8x128xf32, #tpu.memory_space<vmem>>) attributes {dimension_semantics = [#tpu.dimension_semantics<arbitrary>, #tpu.dimension_semantics<arbitrary>], iteration_bounds = array<i64: 1, 1>, scalar_prefetch = 0 : i64, scratch_operands = 0 : i64, tpu.core_type = #tpu.core_type<tc>, window_params = [{transform_indices = @transform_0, window_bounds = array<i64: 16, 128>}, {transform_indices = @transform_1, window_bounds = array<i64: 16, 128>}, {transform_indices = @transform_2, window_bounds = array<i64: 8, 128>}]} {
    %c0_i32 = arith.constant 0 : i32
    %0 = arith.cmpi eq, %arg1, %c0_i32 : i32
    %1 = arith.extui %0 : i1 to i32
    %c0_i32_0 = arith.constant 0 : i32
    %2 = arith.cmpi ne, %1, %c0_i32_0 : i32
    scf.if %2 {
      %cst_16 = arith.constant 0.000000e+00 : f32
      %43 = vector.broadcast %cst_16 : f32 to vector<8x128xf32>
      %c0_17 = arith.constant 0 : index
      %c0_18 = arith.constant 0 : index
      %44 = vector.load %arg4[%c0_17, %c0_18] : memref<8x128xf32, #tpu.memory_space<vmem>>, vector<8x128xf32>
      tpu.vector_store %arg4[%c0_17, %c0_18], %43 {strides = array<i32>} : memref<8x128xf32, #tpu.memory_space<vmem>>, vector<8x128xf32>,
    } else {
    }
    %c0_i32_1 = arith.constant 0 : i32
    %c16_i32 = arith.constant 16 : i32
    %3 = arith.muli %c0_i32_1, %c16_i32 : i32
    %4 = tpu.assume_multiple %3, 8 : i32
    %c0 = arith.constant 0 : index
    %c0_2 = arith.constant 0 : index
    %5 = vector.load %arg4[%c0, %c0_2] : memref<8x128xf32, #tpu.memory_space<vmem>>, vector<8x128xf32>
    %6 = arith.index_cast %4 : i32 to index
    %c0_3 = arith.constant 0 : index
    %7 = vector.load %arg2[%6, %c0_3] : memref<16x128xf32, #tpu.memory_space<vmem>>, vector<16x128xf32>
    %8 = arith.index_cast %4 : i32 to index
    %c0_4 = arith.constant 0 : index
    %9 = vector.load %arg3[%8, %c0_4] : memref<16x128xf32, #tpu.memory_space<vmem>>, vector<16x128xf32>
    %10 = math.absf %7 : vector<16x128xf32>
    %cst = arith.constant 0.000000e+00 : f32
    %11 = vector.broadcast %cst : f32 to vector<16x128xf32>
    %12 = arith.subf %11, %10 : vector<16x128xf32>
    %13 = math.exp %12 : vector<16x128xf32>
    %cst_5 = arith.constant 0.000000e+00 : f32
    %14 = vector.broadcast %cst_5 : f32 to vector<16x128xf32>
    %15 = arith.maximumf %7, %14 : vector<16x128xf32>
    %16 = arith.mulf %7, %9 : vector<16x128xf32>
    %17 = arith.subf %15, %16 : vector<16x128xf32>
    %18 = math.log1p %13 : vector<16x128xf32>
    %19 = arith.addf %17, %18 : vector<16x128xf32>
    %cst_6 = arith.constant 2.000000e+00 : f32
    %20 = vector.broadcast %cst_6 : f32 to vector<16x128xf32>
    %21 = arith.mulf %20, %9 : vector<16x128xf32>
    %cst_7 = arith.constant 1.000000e+00 : f32
    %22 = vector.broadcast %cst_7 : f32 to vector<16x128xf32>
    %23 = arith.subf %21, %22 : vector<16x128xf32>
    %24 = arith.mulf %7, %23 : vector<16x128xf32>
    %cst_8 = arith.constant 0.000000e+00 : f32
    %25 = vector.broadcast %cst_8 : f32 to vector<16x128xf32>
    %26 = arith.cmpf oge, %24, %25 : vector<16x128xf32>
    %cst_9 = arith.constant 1.000000e+00 : f32
    %27 = vector.broadcast %cst_9 : f32 to vector<16x128xf32>
    %28 = arith.select %26, %27, %13 : vector<16x128xi1>, vector<16x128xf32>
    %cst_10 = arith.constant 1.000000e+00 : f32
    %29 = vector.broadcast %cst_10 : f32 to vector<16x128xf32>
    %30 = arith.addf %29, %13 : vector<16x128xf32>
    %31 = tpu.reciprocal %30 : vector<16x128xf32> -> vector<16x128xf32>
    %32 = arith.mulf %28, %31 : vector<16x128xf32>
    %cst_11 = arith.constant 1.000000e+00 : f32
    %33 = vector.broadcast %cst_11 : f32 to vector<16x128xf32>
    %34 = arith.subf %33, %32 : vector<16x128xf32>
    %35 = arith.mulf %34, %34 : vector<16x128xf32>
    %cst_12 = arith.constant 2.500000e-01 : f32
    %36 = vector.broadcast %cst_12 : f32 to vector<16x128xf32>
    %37 = arith.mulf %36, %35 : vector<16x128xf32>
    %38 = arith.mulf %37, %19 : vector<16x128xf32>
    %39 = vector.shape_cast %38 : vector<16x128xf32> to vector<2x8x128xf32>
    %cst_13 = arith.constant dense<0.000000e+00> : vector<8x128xf32>
    %40 = vector.multi_reduction <add>, %39, %cst_13 [0] : vector<2x8x128xf32> to vector<8x128xf32>
    %41 = arith.addf %5, %40 : vector<8x128xf32>
    %c0_14 = arith.constant 0 : index
    %c0_15 = arith.constant 0 : index
    %42 = vector.load %arg4[%c0_14, %c0_15] : memref<8x128xf32, #tpu.memory_space<vmem>>, vector<8x128xf32>
    tpu.vector_store %arg4[%c0_14, %c0_15], %41 {strides = array<i32>} : memref<8x128xf32, #tpu.memory_space<vmem>>, vector<8x128xf32>,
    %c1_i32 = arith.constant 1 : i32
    return
  }
  func.func @transform_0(%arg0: i32, %arg1: i32) -> (i32, i32) {
    %c1_i32 = arith.constant 1 : i32
    %0 = arith.muli %arg0, %c1_i32 : i32
    %1 = arith.addi %0, %arg1 : i32
    %c0_i32 = arith.constant 0 : i32
    %2 = arith.minsi %1, %c0_i32 : i32
    %c0_i32_0 = arith.constant 0 : i32
    %c0_i32_1 = arith.constant 0 : i32
    return %2, %c0_i32_0 : i32, i32
  }
  func.func @transform_1(%arg0: i32, %arg1: i32) -> (i32, i32) {
    %c1_i32 = arith.constant 1 : i32
    %0 = arith.muli %arg0, %c1_i32 : i32
    %1 = arith.addi %0, %arg1 : i32
    %c0_i32 = arith.constant 0 : i32
    %2 = arith.minsi %1, %c0_i32 : i32
    %c0_i32_0 = arith.constant 0 : i32
    %c0_i32_1 = arith.constant 0 : i32
    return %2, %c0_i32_0 : i32, i32
  }
  func.func @transform_2(%arg0: i32, %arg1: i32) -> (i32, i32) {
    %c0_i32 = arith.constant 0 : i32
    %c0_i32_0 = arith.constant 0 : i32
    return %arg0, %c0_i32 : i32, i32
  }
}

</mosaic_0001>

<bundles_post_ra>
// kernel: tpu_custom_call.1
= control target key start
LH: loop header
LB: loop body
LE: loop exit
PB: predicated region body
PF: predicated region fallthrough
CT: control target
= control target key end

     0   :  { %7 = vsyncpa [#allocation3], 0  ;;  %s299_s0 = inlined_call_operand.hbm [shape: f32[16,128], index: 0, kind: input, shape index: {}]   ;;  %s300_s1 = inlined_call_operand.hbm [shape: f32[16,128], index: 1, kind: input, shape index: {}]   ;;  %s301_s2 = inlined_call_operand.hbm [shape: f32[8,128], index: 2, kind: output, shape index: {}]  }
   0x1   :  { %8 = vsyncpa [#allocation6], 0 }
   0x2   :  { %9 = vsyncpa [#allocation4], 0  ;;  %s243_s9 = smov [#allocation2]   ;;  %s171_s13 = scalar_lea.hbm %s299_s0, 256 }
   0x3   :  { %s21_s10 = sshll.u32 %s243_s9, 4  ;;  %p172_p0 = scmp.ne.s32.totalorder %s299_s0, %s171_s13  ;;  %s22_s10 = int_to_ptr.vmem [resolvable:$true] %s21_s10 }
   0x4   :  { %p175_p1 = scmp.lt.u32.totalorder %s171_s13, %s299_s0 }
   0x6   :  { %p177_p2 = pnand %p175_p1, %p172_p0 }
   0x8   :  { %180 = shalt.err (!%p177_p2)
}
   0x9   :  { %s181_s18 = scalar_lea.vmem %s22_s10, 256  ;;  %p186_p4 = scmp.lt.s32.totalorder %s22_s10, %s22_s10 }
   0xa   :  { %p182_p3 = scmp.ne.s32.totalorder %s22_s10, %s181_s18  ;;  %p187_p5 = scmp.lt.s32.totalorder %s181_s18, %s181_s18 }
   0xc   :  { %p188_p6 = por %p187_p5, %p186_p4 }
   0xe   :  { %p189_p7 = pnand %p188_p6, %p182_p3 }
  0x10   :  { %192 = shalt.err (!%p189_p7)
}
  0x11   :  { %s244_s19 = smov 128   ;;  %s245_s20 = smov 8  }
  0x12   :  { %27 = dma.hbm_to_vmem [thread:$0]  %s299_s0, 256, %s22_s10, [#allocation3], %s244_s19, %s244_s19, %s245_s20  }
  0x13   :  { %s246_s23 = smov [#allocation5]   ;;  %s193_s27 = scalar_lea.hbm %s300_s1, 256 }
  0x14   :  { %s39_s24 = sshll.u32 %s246_s23, 4  ;;  %p194_p8 = scmp.ne.s32.totalorder %s300_s1, %s193_s27  ;;  %s40_s24 = int_to_ptr.vmem [resolvable:$true] %s39_s24 }
  0x15   :  { %p197_p9 = scmp.lt.u32.totalorder %s193_s27, %s300_s1 }
  0x17   :  { %p199_p10 = pnand %p197_p9, %p194_p8 }
  0x19   :  { %202 = shalt.err (!%p199_p10)
}
  0x1a   :  { %s203_s4 = scalar_lea.vmem %s40_s24, 256  ;;  %p208_p12 = scmp.lt.s32.totalorder %s40_s24, %s40_s24 }
  0x1b   :  { %p204_p11 = scmp.ne.s32.totalorder %s40_s24, %s203_s4  ;;  %p209_p13 = scmp.lt.s32.totalorder %s203_s4, %s203_s4 }
  0x1d   :  { %p210_p0 = por %p209_p13, %p208_p12 }
  0x1f   :  { %p211_p1 = pnand %p210_p0, %p204_p11 }
  0x21   :  { %214 = shalt.err (!%p211_p1)
}
  0x22   :  { %45 = dma.hbm_to_vmem [thread:$0]  %s300_s1, 256, %s40_s24, [#allocation6], %s244_s19, %s244_s19, %s245_s20  }
  0x23   :  { %237 = dma.done.wait [#allocation3], 256  }
  0x24   :  { %238 = vsyncadd [#allocation3], 4294967040 }
  0x25   :  { %239 = dma.done.wait [#allocation6], 256  }
  0x26   :  { %240 = vsyncadd [#allocation6], 4294967040  ;;  %v66_v0 = vld [vmem:[#allocation2] sm:$0xff]  ;;  %v67_v1 = vld [vmem:[#allocation2 + $0x8] sm:$0xff]  ;;  %s247_s1 = smov [#allocation7]  }
  0x27   :  { %v70_v2 = vand.u32 2147483647, %v66_v0  ;;  %v71_v3 = vand.u32 2147483647, %v67_v1  ;;  %v68_v8 = vld [vmem:[#allocation5] sm:$0xff]  ;;  %v69_v9 = vld [vmem:[#allocation5 + $0x8] sm:$0xff] }
  0x28   :  { %v104_v10 = vmul.f32 2.0, %v68_v8  ;;  %v105_v11 = vmul.f32 2.0, %v69_v9  ;;  %v78_v26 = vmax.f32 %v66_v0, 0.0  ;;  %v80_v27 = vmul.f32 %v68_v8, %v66_v0  ;;  %s137_s6 = sshll.u32 %s247_s1, 4  ;;  %s138_s6 = int_to_ptr.vmem [resolvable:$true] %s137_s6 }
  0x29   :  { %v72_v4 = vsub.f32 0.0, %v70_v2  ;;  %v73_v5 = vsub.f32 0.0, %v71_v3  ;;  %v79_v29 = vmax.f32 %v67_v1, 0.0  ;;  %v81_v30 = vmul.f32 %v69_v9, %v67_v1  ;;  %s215_s7 = scalar_lea.vmem %s138_s6, 128  ;;  %p220_p3 = scmp.lt.s32.totalorder %s138_s6, %s138_s6 }
  0x2a   :  { %v151_v16 = vadd.f32 -1.0, %v104_v10  ;;  %v152_v17 = vadd.f32 -1.0, %v105_v11  ;;  %v82_v40 = vsub.f32 %v78_v26, %v80_v27  ;;  %p216_p2 = scmp.ne.s32.totalorder %s138_s6, %s215_s7  ;;  %p221_p4 = scmp.lt.s32.totalorder %s215_s7, %s215_s7 }
  0x2b   :  { %v74_v6 = vmul.f32 1.442695, %v72_v4  ;;  %v76_v7 = vmul.f32 1.442695, %v73_v5  ;;  %v83_v42 = vsub.f32 %v79_v29, %v81_v30 }
  0x2c   :  { %v108_v20 = vmul.f32 %v151_v16, %v66_v0  ;;  %v109_v21 = vmul.f32 %v152_v17, %v67_v1  ;;  %p222_p5 = por %p221_p4, %p220_p3 }
  0x2d   :  { %159 = vpow2.f32 %v74_v6 }
  0x2e   :  { %161 = vpow2.f32 %v76_v7  ;;  %vm110_vm0 = vcmp.ge.f32.partialorder %v108_v20, 0.0  ;;  %vm111_vm1 = vcmp.ge.f32.partialorder %v109_v21, 0.0  ;;  %p223_p6 = pnand %p222_p5, %p216_p2 }
  0x37   :  { %v160_v12 = vpop.eup %159 }
  0x38   :  { %v162_v13 = vpop.eup %161  ;;  %v84_v14 = vadd.f32 1.0, %v160_v12  ;;  %v87_v18 = vmul.f32 -0.5, %v160_v12  ;;  %v90_v23 = vand.u32 2147483647, %v160_v12  ;;  %v112_v32 = vsel %vm110_vm0, 1.0, %v160_v12 }
  0x39   :  { %v93_v15 = vadd.f32 1.0, %v162_v13  ;;  %v96_v19 = vmul.f32 -0.5, %v162_v13  ;;  %v99_v25 = vand.u32 2147483647, %v162_v13  ;;  %v113_v36 = vsel %vm111_vm1, 1.0, %v162_v13 }
  0x3a   :  { %163 = vlog2.f32 %v84_v14  ;;  %v88_v22 = vadd.f32 1.0, %v87_v18  ;;  %vm91_vm2 = vcmp.lt.f32.partialorder %v90_v23, 0.0004427343 }
  0x3b   :  { %165 = vlog2.f32 %v93_v15  ;;  %v97_v24 = vadd.f32 1.0, %v96_v19  ;;  %vm100_vm3 = vcmp.lt.f32.partialorder %v99_v25, 0.0004427343 }
  0x3c   :  { %167 = vrcp.f32 %v84_v14  ;;  %v89_v31 = vmul.f32 %v160_v12, %v88_v22 }
  0x3d   :  { %169 = vrcp.f32 %v93_v15  ;;  %v98_v35 = vmul.f32 %v162_v13, %v97_v24 }
  0x44   :  { %v164_v28 = vpop.eup %163 }
  0x45   :  { %v166_v33 = vpop.eup %165  ;;  %v86_v34 = vmul.f32 0.6931472, %v164_v28 }
  0x46   :  { %v168_v37 = vpop.eup %167  ;;  %v95_v38 = vmul.f32 0.6931472, %v166_v33 }
  0x47   :  { %v170_v39 = vpop.eup %169  ;;  %v118_v41 = vmul.f32 %v168_v37, %v112_v32  ;;  %v92_v43 = vsel %vm91_vm2, %v89_v31, %v86_v34 }
  0x48   :  { %v119_v44 = vmul.f32 %v170_v39, %v113_v36  ;;  %v101_v45 = vsel %vm100_vm3, %v98_v35, %v95_v38  ;;  %v102_v48 = vadd.f32 %v92_v43, %v82_v40 }
  0x49   :  { %v120_v46 = vsub.f32 1.0, %v118_v41  ;;  %v103_v50 = vadd.f32 %v101_v45, %v83_v42 }
  0x4a   :  { %v121_v47 = vsub.f32 1.0, %v119_v44 }
  0x4b   :  { %v122_v49 = vmul.f32 %v120_v46, %v120_v46 }
  0x4c   :  { %v123_v51 = vmul.f32 %v121_v47, %v121_v47 }
  0x4d   :  { %v124_v52 = vmul.f32 0.25, %v122_v49 }
  0x4e   :  { %v125_v53 = vmul.f32 0.25, %v123_v51 }
  0x4f   :  { %v126_v54 = vmul.f32 %v124_v52, %v102_v48 }
  0x50   :  { %v127_v55 = vmul.f32 %v125_v53, %v103_v50 }
  0x52   :  { %v128_v56 = vadd.f32 %v127_v55, %v126_v54 }
  0x54   :  { %130 = vst [vmem:[#allocation7] sm:$0xff] %v128_v56 }
  0x55   :  { %226 = shalt.err (!%p223_p6)
}
  0x56   :  { %s227_s10 = scalar_lea.hbm %s301_s2, 128 }
  0x57   :  { %p228_p7 = scmp.ne.s32.totalorder %s301_s2, %s227_s10  ;;  %p231_p8 = scmp.lt.u32.totalorder %s227_s10, %s301_s2 }
  0x59   :  { %p233_p9 = pnand %p231_p8, %p228_p7 }
  0x5b   :  { %236 = shalt.err (!%p233_p9)
}
  0x5c   :  { %140 = dma.vmem_to_hbm [thread:$0]  %s138_s6, 128, %s301_s2, [#allocation4]  }
  0x5d   :  { %241 = dma.done.wait [#allocation4], 128  }
  0x5e   :  { %242 = vsyncadd [#allocation4], 4294967168 }
  0x5f   :  { %144 = vsyncpa [#allocation3], 1 }
  0x60   :  { %145 = vsyncpa [#allocation6], 1 }
  0x61   :  { %146 = vsyncpa [#allocation4], 1 }

</bundles_post_ra>
